<compile_context>
chip_gen: v7x
topology: tpu7x:2x2x1
jax: 0.10.0
libtpu: 0.0.40
codegen_flags: <defaults>
</compile_context>

<pallas_src>
import numpy as np
import jax
import jax.numpy as jnp
from jax import lax
from jax.experimental import pallas as pl
from jax.experimental.pallas import tpu as pltpu

THRESH = 1.0        # get_edge_mask(thresh=1.0)
DILATION = 5        # cv2.dilate with np.ones((5,5)) -> 5x5 binary max, radius 2
GT_LO, GT_HI = 0.0, 191.0
HALO = 8            # bottom halo rows per strip (2 dilation + 1 fwd-diff + pad to 8)


def _round_up(x, m):
    return ((x + m - 1) // m) * m


def _metrics_kernel(tm_ref, th_ref, o_ref, out_ref, t_buf):
    TH = tm_ref.shape[1]                 # output rows per strip
    STRIP, Wp = t_buf.shape              # STRIP = TH + HALO

    # Assemble the halo strip: TH "main" rows (these already start 2 rows above
    # this strip's first output row thanks to the wrapper's 2-row top padding)
    # followed by the HALO bottom rows.
    t_buf[0:TH, :] = tm_ref[0]
    t_buf[TH:STRIP, :] = th_ref[0, 0]
    t = t_buf[...]                       # (STRIP, Wp)
    o = o_ref[0]                         # (TH, Wp)

    # Column border masks as single (1, Wp) rows, broadcast at the use sites.
    col = lax.broadcasted_iota(jnp.int32, (1, Wp), 1)
    cl1 = (col < Wp - 1).astype(jnp.float32)
    cl2 = (col < Wp - 2).astype(jnp.float32)
    cg1 = (col >= 1).astype(jnp.float32)
    cg2 = (col >= 2).astype(jnp.float32)

    # Replicate-padded forward differences.  The wrapped roll line is either
    # masked out (x direction) or never read by an output row (y direction).
    # TODO(synk): check via pl.lower_as_mlir that jnp.roll lowers to tpu.rotate;
    # switch the static shifts to pltpu.roll if it does not.
    tx = jnp.roll(t, -1, axis=1)         # t[i, j+1]
    ty = jnp.roll(t, -1, axis=0)         # t[i+1, j]
    edge_x = (jnp.abs(t - tx) * cl1) > THRESH
    edge_y = jnp.abs(t - ty) > THRESH
    edges = (edge_x | edge_y).astype(jnp.float32)   # single astype, {0,1}

    # Separable 5x5 dilation (sum > 0 == binary max).  The vertical pass needs
    # no border masks: the halo guarantees every vertical neighbour of an
    # output row is a real in-strip row.
    # TODO(synk): keep the dilation fully boolean (mask rolls) once i1 rotates
    # are robust in Mosaic; the f32-sum form is used for lowering safety.
    dv = (edges
          + jnp.roll(edges, -1, axis=0) + jnp.roll(edges, 1, axis=0)
          + jnp.roll(edges, -2, axis=0) + jnp.roll(edges, 2, axis=0))
    dil = (dv
           + jnp.roll(dv, -1, axis=1) * cl1 + jnp.roll(dv, 1, axis=1) * cg1
           + jnp.roll(dv, -2, axis=1) * cl2 + jnp.roll(dv, 2, axis=1) * cg2)

    # Output rows live at strip-local rows [2, TH + 2).
    t_out = t[2:TH + 2]
    dil_out = dil[2:TH + 2]

    valid = (t_out > GT_LO) & (t_out < GT_HI) & (o > 0.0)
    eval_b = valid & (dil_out > 0.0)
    cnt_m = eval_b.astype(jnp.float32)
    err_m = jnp.where(eval_b, jnp.abs(t_out - o), 0.0)

    # Route the H-axis reduction through the otherwise idle MXU; lane-dense
    # (1, Wp) partials, cross-lane/strip/batch reduction happens in the wrapper.
    ones = jnp.ones((8, TH), jnp.float32)
    err_row = jnp.dot(ones, err_m, preferred_element_type=jnp.float32)[0:1]
    cnt_row = jnp.dot(ones, cnt_m, preferred_element_type=jnp.float32)[0:1]
    out_ref[0, 0, 0:1, :] = err_row
    out_ref[0, 0, 1:2, :] = cnt_row


def _vmem_limit_bytes(tile_h, strip_h, wp):
    lane = wp * 4
    # 3 double-buffered inputs + fused output + scratch strip + ~10 live
    # strip-sized f32/bool temporaries.
    est = (2 * 2 * tile_h + 2 * HALO + 2 * 2 + strip_h + 10 * strip_h) * lane
    try:
        cap = int(pltpu.get_tpu_info().vmem_capacity_bytes)
    except Exception:
        cap = 64 * 1024 * 1024
    # never below 16 MiB, never above 3/4 of physical (compiler headroom)
    return int(min(max(est, 16 * 1024 * 1024), (cap * 3) // 4))


def metrics_forward(target, output):
    """Pallas implementation of METRICS.forward. Returns a scalar edge EPE."""
    B, C, H, W = target.shape
    assert C == 1
    t = target.reshape(B, H, W).astype(jnp.float32)
    o = output.reshape(B, H, W).astype(jnp.float32)

    Wp = _round_up(W, 128)
    tile_h = _round_up(H, 8) if H <= 96 else 64
    H_out = _round_up(H, tile_h)
    nH = H_out // tile_h
    strip_h = tile_h + HALO

    # t: replicate padding (2 halo rows on top, H_out - H + 6 on the bottom,
    # right pad to a lane multiple).  Replicated rows/cols reproduce the
    # reference's replicate-padded forward differences and contribute only
    # edges that the nearest real row/col already contributes, so the
    # zero-extended dilation on real pixels is unchanged.
    t_pad = jnp.pad(t, ((0, 0), (2, H_out - H + 6), (0, Wp - W)), mode="edge")
    # o: zero padding -> padded pixels fail (o > 0) and never count.
    o_pad = jnp.pad(o, ((0, 0), (0, H_out - H), (0, Wp - W)))

    # Bottom-halo rows for every strip, gathered once in the wrapper so that
    # every pallas input is a plain non-overlapping BlockSpec (fully
    # auto-pipelined, no exposed per-step DMA).
    t_halo = jnp.stack(
        [t_pad[:, (h + 1) * tile_h:(h + 1) * tile_h + HALO, :]
         for h in range(nH)], axis=1)                       # (B, nH, HALO, Wp)

    partials = pl.pallas_call(
        _metrics_kernel,
        out_shape=jax.ShapeDtypeStruct((B, nH, 2, Wp), jnp.float32),
        grid_spec=pltpu.PrefetchScalarGridSpec(
            num_scalar_prefetch=0,
            grid=(B, nH),
            in_specs=[
                pl.BlockSpec((1, tile_h, Wp), lambda b, h: (b, h, 0)),
                pl.BlockSpec((1, 1, HALO, Wp), lambda b, h: (b, h, 0, 0)),
                pl.BlockSpec((1, tile_h, Wp), lambda b, h: (b, h, 0)),
            ],
            out_specs=pl.BlockSpec((1, 1, 2, Wp), lambda b, h: (b, h, 0, 0)),
            scratch_shapes=[pltpu.VMEM((strip_h, Wp), jnp.float32)],
        ),
        compiler_params=pltpu.CompilerParams(
            dimension_semantics=("parallel", "parallel"),
            vmem_limit_bytes=_vmem_limit_bytes(tile_h, strip_h, Wp)),
    )(t_pad, t_halo, o_pad)

    err_sum = jnp.sum(partials[:, :, 0, :])
    cnt = jnp.sum(partials[:, :, 1, :])
    # if torch.sum(eval_mask) == 0 -> edge_error = 0.0 else mean over mask
    return jnp.where(cnt > 0, err_sum / jnp.maximum(cnt, 1.0), 0.0)


def _reference_metrics(target, output, thresh=THRESH, dilation=DILATION):
    """Pure numpy re-implementation of the PyTorch module for validation."""
    t = np.asarray(target)[:, 0].astype(np.float64)
    o = np.asarray(output)[:, 0].astype(np.float64)
    B, H, W = t.shape
    gx = np.zeros_like(t)
    gx[:, :, :-1] = t[:, :, :-1] - t[:, :, 1:]
    gy = np.zeros_like(t)
    gy[:, :-1, :] = t[:, :-1, :] - t[:, 1:, :]
    edges = ((np.abs(gx) > thresh) | (np.abs(gy) > thresh)).astype(np.float64)
    r = dilation // 2
    dil = np.zeros_like(edges)
    for b in range(B):
        for i in range(H):
            for j in range(W):
                i0, i1 = max(0, i - r), min(H, i + r + 1)
                j0, j1 = max(0, j - r), min(W, j + r + 1)
                dil[b, i, j] = edges[b, i0:i1, j0:j1].max()
    mask = ((t > GT_LO) & (t < GT_HI) & (o > 0)).astype(np.float64)
    ev = (mask * dil) > 0
    if ev.sum() == 0:
        return 0.0
    return float(np.abs(t - o)[ev].mean())


if __name__ == "__main__":
    B, C, H, W = 2, 1, 16, 128
    key = jax.random.PRNGKey(0)
    k1, k2 = jax.random.split(key)

    cols = jnp.arange(W, dtype=jnp.float32)
    base = 10.0 + 0.3 * cols                           # gentle ramp, below thresh
    target = jnp.broadcast_to(base, (B, C, H, W))
    target = target.at[:, :, 4:10, 30:80].add(25.0)    # step -> strong edges
    target = target + 0.1 * jax.random.normal(k1, (B, C, H, W))
    output = target + 0.5 * jax.random.normal(k2, (B, C, H, W))
    output = output.at[:, :, :2, :5].set(-1.0)         # invalid predictions
    target = target.at[:, :, 12:, 100:110].set(250.0)  # out-of-range GT

    edge_error = metrics_forward(target, output)
    edge_error = jax.block_until_ready(edge_error)

    ref = _reference_metrics(target, output)
    assert abs(float(edge_error) - ref) < 1e-4 * max(1.0, abs(ref)), (
        f"mismatch: pallas={float(edge_error)} ref={ref}")

    print("KERNEL_OK")
</pallas_src>

<mosaic_0001>
module attributes {stable_mosaic.version = 11 : i64} {
  func.func @_metrics_kernel(%arg0: i32, %arg1: i32, %arg2: memref<1x16x128xf32, #tpu.memory_space<vmem>>, %arg3: memref<1x1x8x128xf32, #tpu.memory_space<vmem>>, %arg4: memref<1x16x128xf32, #tpu.memory_space<vmem>>, %arg5: memref<1x1x2x128xf32, #tpu.memory_space<vmem>>, %arg6: memref<24x128xf32, #tpu.memory_space<vmem>>) attributes {dimension_semantics = [#tpu.dimension_semantics<parallel>, #tpu.dimension_semantics<parallel>], iteration_bounds = array<i64: 2, 1>, scalar_prefetch = 0 : i64, scratch_operands = 1 : i64, tpu.core_type = #tpu.core_type<tc>, window_params = [{transform_indices = @transform_0, window_bounds = array<i64: 1, 16, 128>}, {transform_indices = @transform_1, window_bounds = array<i64: 1, 1, 8, 128>}, {transform_indices = @transform_2, window_bounds = array<i64: 1, 16, 128>}, {transform_indices = @transform_3, window_bounds = array<i64: 1, 1, 2, 128>}]} {
    %c0 = arith.constant 0 : index
    %c0_0 = arith.constant 0 : index
    %c0_1 = arith.constant 0 : index
    %0 = vector.load %arg2[%c0, %c0_0, %c0_1] : memref<1x16x128xf32, #tpu.memory_space<vmem>>, vector<1x16x128xf32>
    %1 = vector.shape_cast %0 : vector<1x16x128xf32> to vector<16x128xf32>
    %c0_2 = arith.constant 0 : index
    %c0_3 = arith.constant 0 : index
    %2 = vector.load %arg6[%c0_2, %c0_3] : memref<24x128xf32, #tpu.memory_space<vmem>>, vector<16x128xf32>
    tpu.vector_store %arg6[%c0_2, %c0_3], %1 {strides = array<i32>} : memref<24x128xf32, #tpu.memory_space<vmem>>, vector<16x128xf32>,
    %c0_4 = arith.constant 0 : index
    %c0_5 = arith.constant 0 : index
    %c0_6 = arith.constant 0 : index
    %c0_7 = arith.constant 0 : index
    %3 = vector.load %arg3[%c0_4, %c0_5, %c0_6, %c0_7] : memref<1x1x8x128xf32, #tpu.memory_space<vmem>>, vector<1x1x8x128xf32>
    %4 = vector.shape_cast %3 : vector<1x1x8x128xf32> to vector<8x128xf32>
    %c16 = arith.constant 16 : index
    %c0_8 = arith.constant 0 : index
    %5 = vector.load %arg6[%c16, %c0_8] : memref<24x128xf32, #tpu.memory_space<vmem>>, vector<8x128xf32>
    tpu.vector_store %arg6[%c16, %c0_8], %4 {strides = array<i32>} : memref<24x128xf32, #tpu.memory_space<vmem>>, vector<8x128xf32>,
    %c0_9 = arith.constant 0 : index
    %c0_10 = arith.constant 0 : index
    %6 = vector.load %arg6[%c0_9, %c0_10] : memref<24x128xf32, #tpu.memory_space<vmem>>, vector<24x128xf32>
    %c0_11 = arith.constant 0 : index
    %c0_12 = arith.constant 0 : index
    %c0_13 = arith.constant 0 : index
    %7 = vector.load %arg4[%c0_11, %c0_12, %c0_13] : memref<1x16x128xf32, #tpu.memory_space<vmem>>, vector<1x16x128xf32>
    %8 = vector.shape_cast %7 : vector<1x16x128xf32> to vector<16x128xf32>
    %9 = tpu.iota {dimensions = array<i32: 1>} : vector<1x128xi32>
    %c127_i32 = arith.constant 127 : i32
    %10 = vector.broadcast %c127_i32 : i32 to vector<1x128xi32>
    %11 = arith.cmpi slt, %9, %10 : vector<1x128xi32>
    %12 = arith.extui %11 : vector<1x128xi1> to vector<1x128xi32>
    %13 = arith.sitofp %12 : vector<1x128xi32> to vector<1x128xf32>
    %c126_i32 = arith.constant 126 : i32
    %14 = vector.broadcast %c126_i32 : i32 to vector<1x128xi32>
    %15 = arith.cmpi slt, %9, %14 : vector<1x128xi32>
    %16 = arith.extui %15 : vector<1x128xi1> to vector<1x128xi32>
    %17 = arith.sitofp %16 : vector<1x128xi32> to vector<1x128xf32>
    %c1_i32 = arith.constant 1 : i32
    %18 = vector.broadcast %c1_i32 : i32 to vector<1x128xi32>
    %19 = arith.cmpi sge, %9, %18 : vector<1x128xi32>
    %20 = arith.extui %19 : vector<1x128xi1> to vector<1x128xi32>
    %21 = arith.sitofp %20 : vector<1x128xi32> to vector<1x128xf32>
    %c2_i32 = arith.constant 2 : i32
    %22 = vector.broadcast %c2_i32 : i32 to vector<1x128xi32>
    %23 = arith.cmpi sge, %9, %22 : vector<1x128xi32>
    %24 = arith.extui %23 : vector<1x128xi1> to vector<1x128xi32>
    %25 = arith.sitofp %24 : vector<1x128xi32> to vector<1x128xf32>
    %26 = vector.extract_strided_slice %6 {offsets = [0, 1], sizes = [24, 127], strides = [1, 1]} : vector<24x128xf32> to vector<24x127xf32>
    %27 = vector.extract_strided_slice %6 {offsets = [0, 0], sizes = [24, 1], strides = [1, 1]} : vector<24x128xf32> to vector<24x1xf32>
    %28 = tpu.concatenate %26, %27 in 1 : vector<24x127xf32>, vector<24x1xf32> -> vector<24x128xf32>
    %29 = vector.extract_strided_slice %6 {offsets = [1, 0], sizes = [23, 128], strides = [1, 1]} : vector<24x128xf32> to vector<23x128xf32>
    %30 = vector.extract_strided_slice %6 {offsets = [0, 0], sizes = [1, 128], strides = [1, 1]} : vector<24x128xf32> to vector<1x128xf32>
    %31 = tpu.concatenate %29, %30 in 0 : vector<23x128xf32>, vector<1x128xf32> -> vector<24x128xf32>
    %32 = arith.subf %6, %28 : vector<24x128xf32>
    %33 = math.absf %32 : vector<24x128xf32>
    %34 = vector.broadcast %13 : vector<1x128xf32> to vector<24x128xf32>
    %35 = arith.mulf %33, %34 : vector<24x128xf32>
    %cst = arith.constant 1.000000e+00 : f32
    %36 = vector.broadcast %cst : f32 to vector<24x128xf32>
    %37 = arith.cmpf ogt, %35, %36 : vector<24x128xf32>
    %38 = arith.subf %6, %31 : vector<24x128xf32>
    %39 = math.absf %38 : vector<24x128xf32>
    %cst_14 = arith.constant 1.000000e+00 : f32
    %40 = vector.broadcast %cst_14 : f32 to vector<24x128xf32>
    %41 = arith.cmpf ogt, %39, %40 : vector<24x128xf32>
    %42 = arith.ori %37, %41 : vector<24x128xi1>
    %43 = arith.extui %42 : vector<24x128xi1> to vector<24x128xi32>
    %44 = arith.sitofp %43 : vector<24x128xi32> to vector<24x128xf32>
    %45 = vector.extract_strided_slice %44 {offsets = [1, 0], sizes = [23, 128], strides = [1, 1]} : vector<24x128xf32> to vector<23x128xf32>
    %46 = vector.extract_strided_slice %44 {offsets = [0, 0], sizes = [1, 128], strides = [1, 1]} : vector<24x128xf32> to vector<1x128xf32>
    %47 = tpu.concatenate %45, %46 in 0 : vector<23x128xf32>, vector<1x128xf32> -> vector<24x128xf32>
    %48 = arith.addf %44, %47 : vector<24x128xf32>
    %49 = vector.extract_strided_slice %44 {offsets = [23, 0], sizes = [1, 128], strides = [1, 1]} : vector<24x128xf32> to vector<1x128xf32>
    %50 = vector.extract_strided_slice %44 {offsets = [0, 0], sizes = [23, 128], strides = [1, 1]} : vector<24x128xf32> to vector<23x128xf32>
    %51 = tpu.concatenate %49, %50 in 0 : vector<1x128xf32>, vector<23x128xf32> -> vector<24x128xf32>
    %52 = arith.addf %48, %51 : vector<24x128xf32>
    %53 = vector.extract_strided_slice %44 {offsets = [2, 0], sizes = [22, 128], strides = [1, 1]} : vector<24x128xf32> to vector<22x128xf32>
    %54 = vector.extract_strided_slice %44 {offsets = [0, 0], sizes = [2, 128], strides = [1, 1]} : vector<24x128xf32> to vector<2x128xf32>
    %55 = tpu.concatenate %53, %54 in 0 : vector<22x128xf32>, vector<2x128xf32> -> vector<24x128xf32>
    %56 = arith.addf %52, %55 : vector<24x128xf32>
    %57 = vector.extract_strided_slice %44 {offsets = [22, 0], sizes = [2, 128], strides = [1, 1]} : vector<24x128xf32> to vector<2x128xf32>
    %58 = vector.extract_strided_slice %44 {offsets = [0, 0], sizes = [22, 128], strides = [1, 1]} : vector<24x128xf32> to vector<22x128xf32>
    %59 = tpu.concatenate %57, %58 in 0 : vector<2x128xf32>, vector<22x128xf32> -> vector<24x128xf32>
    %60 = arith.addf %56, %59 : vector<24x128xf32>
    %61 = vector.extract_strided_slice %60 {offsets = [0, 1], sizes = [24, 127], strides = [1, 1]} : vector<24x128xf32> to vector<24x127xf32>
    %62 = vector.extract_strided_slice %60 {offsets = [0, 0], sizes = [24, 1], strides = [1, 1]} : vector<24x128xf32> to vector<24x1xf32>
    %63 = tpu.concatenate %61, %62 in 1 : vector<24x127xf32>, vector<24x1xf32> -> vector<24x128xf32>
    %64 = vector.broadcast %13 : vector<1x128xf32> to vector<24x128xf32>
    %65 = arith.mulf %63, %64 : vector<24x128xf32>
    %66 = arith.addf %60, %65 : vector<24x128xf32>
    %67 = vector.extract_strided_slice %60 {offsets = [0, 127], sizes = [24, 1], strides = [1, 1]} : vector<24x128xf32> to vector<24x1xf32>
    %68 = vector.extract_strided_slice %60 {offsets = [0, 0], sizes = [24, 127], strides = [1, 1]} : vector<24x128xf32> to vector<24x127xf32>
    %69 = tpu.concatenate %67, %68 in 1 : vector<24x1xf32>, vector<24x127xf32> -> vector<24x128xf32>
    %70 = vector.broadcast %21 : vector<1x128xf32> to vector<24x128xf32>
    %71 = arith.mulf %69, %70 : vector<24x128xf32>
    %72 = arith.addf %66, %71 : vector<24x128xf32>
    %73 = vector.extract_strided_slice %60 {offsets = [0, 2], sizes = [24, 126], strides = [1, 1]} : vector<24x128xf32> to vector<24x126xf32>
    %74 = vector.extract_strided_slice %60 {offsets = [0, 0], sizes = [24, 2], strides = [1, 1]} : vector<24x128xf32> to vector<24x2xf32>
    %75 = tpu.concatenate %73, %74 in 1 : vector<24x126xf32>, vector<24x2xf32> -> vector<24x128xf32>
    %76 = vector.broadcast %17 : vector<1x128xf32> to vector<24x128xf32>
    %77 = arith.mulf %75, %76 : vector<24x128xf32>
    %78 = arith.addf %72, %77 : vector<24x128xf32>
    %79 = vector.extract_strided_slice %60 {offsets = [0, 126], sizes = [24, 2], strides = [1, 1]} : vector<24x128xf32> to vector<24x2xf32>
    %80 = vector.extract_strided_slice %60 {offsets = [0, 0], sizes = [24, 126], strides = [1, 1]} : vector<24x128xf32> to vector<24x126xf32>
    %81 = tpu.concatenate %79, %80 in 1 : vector<24x2xf32>, vector<24x126xf32> -> vector<24x128xf32>
    %82 = vector.broadcast %25 : vector<1x128xf32> to vector<24x128xf32>
    %83 = arith.mulf %81, %82 : vector<24x128xf32>
    %84 = arith.addf %78, %83 : vector<24x128xf32>
    %85 = vector.extract_strided_slice %6 {offsets = [2, 0], sizes = [16, 128], strides = [1, 1]} : vector<24x128xf32> to vector<16x128xf32>
    %86 = vector.extract_strided_slice %84 {offsets = [2, 0], sizes = [16, 128], strides = [1, 1]} : vector<24x128xf32> to vector<16x128xf32>
    %cst_15 = arith.constant 0.000000e+00 : f32
    %87 = vector.broadcast %cst_15 : f32 to vector<16x128xf32>
    %88 = arith.cmpf ogt, %85, %87 : vector<16x128xf32>
    %cst_16 = arith.constant 1.910000e+02 : f32
    %89 = vector.broadcast %cst_16 : f32 to vector<16x128xf32>
    %90 = arith.cmpf olt, %85, %89 : vector<16x128xf32>
    %91 = arith.andi %88, %90 : vector<16x128xi1>
    %cst_17 = arith.constant 0.000000e+00 : f32
    %92 = vector.broadcast %cst_17 : f32 to vector<16x128xf32>
    %93 = arith.cmpf ogt, %8, %92 : vector<16x128xf32>
    %94 = arith.andi %91, %93 : vector<16x128xi1>
    %cst_18 = arith.constant 0.000000e+00 : f32
    %95 = vector.broadcast %cst_18 : f32 to vector<16x128xf32>
    %96 = arith.cmpf ogt, %86, %95 : vector<16x128xf32>
    %97 = arith.andi %94, %96 : vector<16x128xi1>
    %98 = arith.extui %97 : vector<16x128xi1> to vector<16x128xi32>
    %99 = arith.sitofp %98 : vector<16x128xi32> to vector<16x128xf32>
    %100 = arith.subf %85, %8 : vector<16x128xf32>
    %101 = math.absf %100 : vector<16x128xf32>
    %cst_19 = arith.constant 0.000000e+00 : f32
    %102 = vector.broadcast %cst_19 : f32 to vector<16x128xf32>
    %103 = arith.select %97, %101, %102 : vector<16x128xi1>, vector<16x128xf32>
    %cst_20 = arith.constant 1.000000e+00 : f32
    %104 = vector.broadcast %cst_20 : f32 to vector<8x16xf32>
    %cst_21 = arith.constant dense<0.000000e+00> : vector<8x128xf32>
    %105 = tpu.matmul %104, %103, %cst_21 {dimension_numbers = #tpu.dot_dimension_numbers<[1], [0], [0], [1], [0, 0, 1, 1], [], []>} : vector<8x16xf32>, vector<16x128xf32>, vector<8x128xf32> -> vector<8x128xf32>
    %106 = vector.extract_strided_slice %105 {offsets = [0, 0], sizes = [1, 128], strides = [1, 1]} : vector<8x128xf32> to vector<1x128xf32>
    %cst_22 = arith.constant dense<0.000000e+00> : vector<8x128xf32>
    %107 = tpu.matmul %104, %99, %cst_22 {dimension_numbers = #tpu.dot_dimension_numbers<[1], [0], [0], [1], [0, 0, 1, 1], [], []>} : vector<8x16xf32>, vector<16x128xf32>, vector<8x128xf32> -> vector<8x128xf32>
    %108 = vector.extract_strided_slice %107 {offsets = [0, 0], sizes = [1, 128], strides = [1, 1]} : vector<8x128xf32> to vector<1x128xf32>
    %c0_23 = arith.constant 0 : index
    %c0_24 = arith.constant 0 : index
    %c0_25 = arith.constant 0 : index
    %c0_26 = arith.constant 0 : index
    %109 = vector.load %arg5[%c0_23, %c0_24, %c0_25, %c0_26] : memref<1x1x2x128xf32, #tpu.memory_space<vmem>>, vector<1x1x1x128xf32>
    %110 = vector.shape_cast %109 : vector<1x1x1x128xf32> to vector<1x128xf32>
    %111 = vector.shape_cast %106 : vector<1x128xf32> to vector<1x1x1x128xf32>
    tpu.vector_store %arg5[%c0_23, %c0_24, %c0_25, %c0_26], %111 {strides = array<i32>} : memref<1x1x2x128xf32, #tpu.memory_space<vmem>>, vector<1x1x1x128xf32>,
    %c0_27 = arith.constant 0 : index
    %c0_28 = arith.constant 0 : index
    %c1 = arith.constant 1 : index
    %c0_29 = arith.constant 0 : index
    %112 = vector.load %arg5[%c0_27, %c0_28, %c1, %c0_29] : memref<1x1x2x128xf32, #tpu.memory_space<vmem>>, vector<1x1x1x128xf32>
    %113 = vector.shape_cast %112 : vector<1x1x1x128xf32> to vector<1x128xf32>
    %114 = vector.shape_cast %108 : vector<1x128xf32> to vector<1x1x1x128xf32>
    tpu.vector_store %arg5[%c0_27, %c0_28, %c1, %c0_29], %114 {strides = array<i32>} : memref<1x1x2x128xf32, #tpu.memory_space<vmem>>, vector<1x1x1x128xf32>,
    return
  }
  func.func @transform_0(%arg0: i32, %arg1: i32) -> (i32, i32, i32) {
    %c0_i32 = arith.constant 0 : i32
    %c0_i32_0 = arith.constant 0 : i32
    return %arg0, %arg1, %c0_i32 : i32, i32, i32
  }
  func.func @transform_1(%arg0: i32, %arg1: i32) -> (i32, i32, i32, i32) {
    %c0_i32 = arith.constant 0 : i32
    %c0_i32_0 = arith.constant 0 : i32
    %c0_i32_1 = arith.constant 0 : i32
    return %arg0, %arg1, %c0_i32, %c0_i32_0 : i32, i32, i32, i32
  }
  func.func @transform_2(%arg0: i32, %arg1: i32) -> (i32, i32, i32) {
    %c0_i32 = arith.constant 0 : i32
    %c0_i32_0 = arith.constant 0 : i32
    return %arg0, %arg1, %c0_i32 : i32, i32, i32
  }
  func.func @transform_3(%arg0: i32, %arg1: i32) -> (i32, i32, i32, i32) {
    %c0_i32 = arith.constant 0 : i32
    %c0_i32_0 = arith.constant 0 : i32
    %c0_i32_1 = arith.constant 0 : i32
    return %arg0, %arg1, %c0_i32, %c0_i32_0 : i32, i32, i32, i32
  }
}

</mosaic_0001>

<bundles_post_ra>
// kernel: tpu_custom_call.1
= control target key start
LH: loop header
LB: loop body
LE: loop exit
PB: predicated region body
PF: predicated region fallthrough
CT: control target
= control target key end

     0   :  { %s1616_s0 = inlined_call_operand.hbm [shape: f32[2,24,128], index: 0, kind: input, shape index: {}]   ;;  %s1617_s1 = inlined_call_operand.hbm [shape: f32[2,1,8,128], index: 1, kind: input, shape index: {}]   ;;  %s1618_s2 = inlined_call_operand.hbm [shape: f32[2,16,128], index: 2, kind: input, shape index: {}]   ;;  %s1619_s3 = inlined_call_operand.hbm [shape: f32[2,1,2,128], index: 3, kind: output, shape index: {}]  }
   0x1   :  { %1623 = sst [smem:[#allocation14_spill]] %s1616_s0 }
   0x2   :  { %1624 = sst [smem:[#allocation15_spill]] %s1617_s1 }
   0x3   :  { %8 = vsyncpa [#allocation4], 0 }
   0x4   :  { %10 = vsyncpa [#allocation4 + $0x1], 0 }
   0x5   :  { %11 = vsyncpa [#allocation7], 0 }
   0x6   :  { %13 = vsyncpa [#allocation7 + $0x1], 0 }
   0x7   :  { %14 = vsyncpa [#allocation5], 0 }
   0x8   :  { %16 = vsyncpa [#allocation5 + $0x1], 0  ;;  %s1216_s12 = smov 0   ;;  %s1218_s13 = smov 0  }
   0x9   :  { %s1220_s14 = smov 0   ;;  %s1222_s15 = smov 0  }
   0xa   :  { %s1224_s16 = smov 0   ;;  %s1226_s17 = smov 0  }
   0xb LB: > { %s1247_s18 = sadd.s32 4294967295, %s1179_s17   ;;  %s861_s19 = sadd.s32 4294967294, %s1179_s17   ;;  %s1179_s17 = sphi %s1226_s17, %s22_s17   ;;  %s1175_s16 = sphi %s1224_s16, %s1653_s16   ;;  %s1171_s15 = sphi %s1222_s15, %s1652_s15   ;;  %s1167_s14 = sphi %s1220_s14, %s1651_s14   ;;  %s1163_s13 = sphi %s1218_s13, %s1650_s13   ;;  %s1159_s12 = sphi %s1216_s12, %s1649_s12  }
   0xc   : > { %s34_s20 = sadd.s32 1, %s1175_s16  ;;  %s43_s21 = sadd.s32 1, %s1167_s14 }
   0xd   : > { %p36_p0 = scmp.ge.s32.totalorder %s34_s20, 2  ;;  %p50_p1 = scmp.ne.s32.totalorder %s1167_s14, %s1163_s13 }
   0xe   : > { %p51_p2 = scmp.eq.s32.totalorder %s1179_s17, 0  ;;  %p56_p3 = scmp.ne.s32.totalorder %s1163_s13, %s1159_s12 }
   0xf   : > { %s1655_s20 = smov (%p36_p0, %s34_s20), 0  ;;  %p57_p5 = scmp.eq.s32.totalorder %s1247_s18, 0 }
  0x10   : > { %1625 = sst [smem:[#allocation13_spill]] %s1655_s20  ;;  %p1259_p4 = por %p51_p2, %p50_p1 }
  0x11   : > { %s38_s23 = ssub.s32 %s1175_s16, %s1655_s20  ;;  %p138_p6 = scmp.eq.s32.totalorder %s1247_s18, 1 }
  0x12   : > { %p41_p7 = scmp.eq.s32.totalorder %s38_s23, 0  ;;  %p1267_p8 = por %p57_p5, %p56_p3 }
  0x13   : > { %p1271_p9 = por %p138_p6, %p50_p1  ;;  %p144_p10 = scmp.eq.s32.totalorder %s861_s19, 1 }
  0x14   : > { %s1627_s24 = scalar_select %p1267_p8, 1, 0 }
  0x15   : > { %s1628_s25 = scalar_select %p1271_p9, 1, 0 }
  0x16   : > { %s1276_s26 = scalar_select %p41_p7, %s1167_s14, %s43_s21  }
  0x17   : > { %p1278_p11 = por %p144_p10, %p56_p3  ;;  %p942_p13 = scmp.lt.s32.totalorder %s1179_s17, 2 }
  0x18   : > { %s1285_s28 = sand.u32 1, %s1167_s14   ;;  %s193_s30 = sand.u32 1, %s1179_s17  }
  0x19   : > { %s1629_s27 = scalar_select %p1278_p11, 1, 0 }
  0x1a   : > { %s864_s29 = sshll.u32 %s1285_s28, 4  ;;  %p1291_p0 = pnand %p942_p13, %p1259_p4 }
  0x1b   : > { %s866_s5 = sshll.u32 %s1285_s28, 3  ;;  %s867_s6 = sshll.u32 %s1175_s16, 7 }
  0x1c   : > { %s1631_s1 = sld [smem:[#allocation15_spill]]  ;;  %s197_s10 = scalar_lea.vmem [#allocation6], %s866_s5 }
  0x1d   : > { %s205_s11 = sshll.u32 %s197_s10, 4  ;;  %s1304_s19 = scalar_lea.sflag [#allocation7], %s193_s30  ;;  %s1302_s11 = int_to_ptr.vmem [resolvable:$true] %s205_s11 }
  0x1e   : > { %p1310_p2 = pneg %p1291_p0 }
  0x22   : > { %s1300_s9 = scalar_lea.hbm %s1631_s1, %s867_s6  ;;  %s1008_s5 = scalar_lea.hbm %s1631_s1, 256 }
  0x23   : > { %s1003_s21 = scalar_lea.hbm %s1300_s9, 128  ;;  %p1009_p5 = scmp.lt.u32.totalorder %s1300_s9, %s1631_s1 }
  0x24   : > { %p1004_p1 = scmp.ne.s32.totalorder %s1300_s9, %s1003_s21  ;;  %p1010_p6 = scmp.lt.u32.totalorder %s1008_s5, %s1003_s21 }
  0x25   : > { %p1012_p10 = scmp.lt.u32.totalorder %s1003_s21, %s1300_s9 }
  0x26   : > { %p1006_p3 = pnand %p1310_p2, %p1004_p1  ;;  %p1011_p7 = por %p1010_p6, %p1009_p5 }
  0x28   : > { %p1007_p4 = pneg %p1006_p3  ;;  %p1013_p13 = por %p1012_p10, %p1011_p7 }
  0x2a   : > { %p1014_p12 = pnand %p1013_p13, %p1007_p4 }
  0x2c   : > { %1017 = shalt.err (!%p1014_p12)
}
  0x2d   : > { %s1018_s30 = scalar_lea.vmem %s1302_s11, 128  ;;  %s1181_s10 = smov [#allocation6]  }
  0x2e   : > { %p1019_p1 = scmp.ne.s32.totalorder %s1302_s11, %s1018_s30  ;;  %s1023_s23 = sshll.u32 %s1181_s10, 4  ;;  %s1024_s23 = int_to_ptr.vmem [resolvable:$false] %s1023_s23 }
  0x2f   : > { %s1025_s6 = scalar_lea.vmem %s1024_s23, 256  ;;  %p1026_p9 = scmp.lt.s32.totalorder %s1302_s11, %s1024_s23 }
  0x30   : > { %p1021_p3 = pnand %p1019_p1, %p1310_p2  ;;  %p1027_p8 = scmp.lt.s32.totalorder %s1025_s6, %s1018_s30 }
  0x32   : > { %p1022_p11 = pneg %p1021_p3  ;;  %p1028_p5 = por %p1027_p8, %p1026_p9 }
  0x34   : > { %p1029_p6 = pnand %p1028_p5, %p1022_p11 }
  0x36   : > { %1032 = shalt.err (!%p1029_p6)
}
  0x37   : > { %934 = dma.hbm_to_vmem [thread:$0]  (!%p1291_p0), %s1300_s9, 128, %s1302_s11, %s1304_s19  }
  0x38   : > { %s216_s21 = scalar_lea.vmem [#allocation8], %s864_s29  ;;  %p871_p8 = scmp.ge.s32.totalorder %s1179_s17, 1 }
  0x39   : > { %s225_s5 = sshll.u32 %s216_s21, 4  ;;  %p233_p9 = scmp.lt.s32.totalorder %s1179_s17, 3  ;;  %s1337_s5 = int_to_ptr.vmem [resolvable:$true] %s225_s5 }
  0x3a   : > { %s919_s8 = smul.u32 384, %s1175_s16  ;;  %s168_s30 = scalar_lea.vmem [#allocation3], %s864_s29 }
  0x3b   : > { %p1340_p11 = pnand %p871_p8, %p233_p9  ;;  %s183_s10 = sshll.u32 %s168_s30, 4  ;;  %s1352_s10 = int_to_ptr.vmem [resolvable:$true] %s183_s10 }
  0x3c   : > { %s1634_s0 = sld [smem:[#allocation14_spill]]  ;;  %s892_s11 = sshll.u32 %s1175_s16, 8 }
  0x3d   : > { %s1633_s7 = scalar_select %p1340_p11, 1, 0 }
  0x3e   : > { %s165_s21 = scalar_lea.sflag [#allocation4], %s1285_s28 }
  0x42   : > { %s1350_s9 = scalar_lea.hbm %s1634_s0, %s919_s8  ;;  %s1038_s20 = scalar_lea.hbm %s1634_s0, 768 }
  0x43   : > { %s1033_s1 = scalar_lea.hbm %s1350_s9, 256  ;;  %p1039_p10 = scmp.lt.u32.totalorder %s1350_s9, %s1634_s0 }
  0x44   : > { %p1034_p12 = scmp.ne.s32.totalorder %s1350_s9, %s1033_s1  ;;  %p1040_p13 = scmp.lt.u32.totalorder %s1038_s20, %s1033_s1 }
  0x45   : > { %p1042_p3 = scmp.lt.u32.totalorder %s1033_s1, %s1350_s9 }
  0x46   : > { %p1036_p4 = pnand %p1034_p12, %p1310_p2  ;;  %p1041_p1 = por %p1040_p13, %p1039_p10 }
  0x48   : > { %p1037_p7 = pneg %p1036_p4  ;;  %p1043_p5 = por %p1042_p3, %p1041_p1 }
  0x4a   : > { %p1044_p6 = pnand %p1043_p5, %p1037_p7 }
  0x4c   : > { %1047 = shalt.err (!%p1044_p6)
}
  0x4d   : > { %s1048_s6 = scalar_lea.vmem %s1352_s10, 256  ;;  %s1182_s29 = smov [#allocation3]  }
  0x4e   : > { %p1049_p8 = scmp.ne.s32.totalorder %s1352_s10, %s1048_s6  ;;  %s1053_s30 = sshll.u32 %s1182_s29, 4  ;;  %s1054_s30 = int_to_ptr.vmem [resolvable:$false] %s1053_s30 }
  0x4f   : > { %s1055_s23 = scalar_lea.vmem %s1054_s30, 512  ;;  %p1056_p4 = scmp.lt.s32.totalorder %s1352_s10, %s1054_s30 }
  0x50   : > { %p1051_p9 = pnand %p1049_p8, %p1310_p2  ;;  %p1057_p11 = scmp.lt.s32.totalorder %s1055_s23, %s1048_s6 }
  0x52   : > { %p1052_p12 = pneg %p1051_p9  ;;  %p1058_p10 = por %p1057_p11, %p1056_p4 }
  0x54   : > { %p1059_p13 = pnand %p1058_p10, %p1052_p12 }
  0x56   : > { %1062 = shalt.err (!%p1059_p13)
}
  0x57   : > { %s1183_s1 = smov 128   ;;  %s1184_s20 = smov 8  }
  0x58   : > { %931 = dma.hbm_to_vmem [thread:$0]  (!%p1291_p0), %s1350_s9, 256, %s1352_s10, %s165_s21, %s1183_s1, %s1183_s1, %s1184_s20  }
  0x59   : > { %s1387_s29 = scalar_lea.hbm %s1618_s2, %s892_s11  ;;  %s1068_s28 = scalar_lea.hbm %s1618_s2, 512 }
  0x5a   : > { %s1063_s30 = scalar_lea.hbm %s1387_s29, 256  ;;  %p1069_p3 = scmp.lt.u32.totalorder %s1387_s29, %s1618_s2 }
  0x5b   : > { %p1064_p11 = scmp.ne.s32.totalorder %s1387_s29, %s1063_s30  ;;  %p1070_p5 = scmp.lt.u32.totalorder %s1068_s28, %s1063_s30 }
  0x5c   : > { %p1072_p8 = scmp.lt.u32.totalorder %s1063_s30, %s1387_s29 }
  0x5d   : > { %p1066_p7 = pnand %p1064_p11, %p1310_p2  ;;  %p1071_p6 = por %p1070_p5, %p1069_p3 }
  0x5f   : > { %p1067_p1 = pneg %p1066_p7  ;;  %p1073_p9 = por %p1072_p8, %p1071_p6 }
  0x61   : > { %p1074_p12 = pnand %p1073_p9, %p1067_p1 }
  0x63   : > { %1077 = shalt.err (!%p1074_p12)
}
  0x64   : > { %s1078_s11 = scalar_lea.vmem %s1337_s5, 256  ;;  %s1185_s0 = smov [#allocation8]  }
  0x65   : > { %p1079_p4 = scmp.ne.s32.totalorder %s1337_s5, %s1078_s11  ;;  %s1083_s21 = sshll.u32 %s1185_s0, 4  ;;  %s1084_s21 = int_to_ptr.vmem [resolvable:$false] %s1083_s21 }
  0x66   : > { %s1085_s8 = scalar_lea.vmem %s1084_s21, 512  ;;  %p1086_p11 = scmp.lt.s32.totalorder %s1337_s5, %s1084_s21 }
  0x67   : > { %p1081_p10 = pnand %p1079_p4, %p1310_p2  ;;  %p1087_p7 = scmp.lt.s32.totalorder %s1085_s8, %s1078_s11 }
  0x69   : > { %p1082_p13 = pneg %p1081_p10  ;;  %p1088_p3 = por %p1087_p7, %p1086_p11 }
  0x6b   : > { %p1089_p5 = pnand %p1088_p3, %p1082_p13 }
  0x6d   : > { %1092 = shalt.err (!%p1089_p5)
}
  0x6e   : > { %937 = dma.hbm_to_vmem [thread:$0]  (!%p1291_p0), %s1387_s29, 256, %s1337_s5, %s1304_s19, %s1183_s1, %s1183_s1, %s1184_s20  }
  0x6f   : > { %p1635_p2 = scmp.ne.s32.totalorder %s1633_s7, 0 }
  0x70   : > { %s1417_s22 = sand.u32 (!%p1635_p2), 1, %s1163_s13   ;;  %p1636_p1 = scmp.ne.s32.totalorder (!%p1635_p2), %s1627_s24, 0 }
  0x71   : > { %237 = sbr.rel (%p1635_p2) target bundleno = 642 (0x282), region = 32  ;;  %s872_s6 = sshll.u32 (!%p1635_p2), %s1417_s22, 4 }
  0x72   : > { %s240_s30 = scalar_lea.sflag (!%p1635_p2), [#allocation4], %s1417_s22  ;;  %s243_s4 = scalar_lea.vmem (!%p1635_p2), [#allocation3], %s872_s6 }
  0x78   : > { %1146 = dma.done.wait (%p1636_p1), %s240_s30, 256  }
  0x79   : > { %1148 = vsyncadd (%p1636_p1), %s240_s30, 4294967040  ;;  %s248_s19 = sand.u32 1, %s1247_s18   ;;  %s873_s5 = sshll.u32 %s1417_s22, 3 }
  0x7a   : > { %s249_s7 = scalar_lea.sflag [#allocation7], %s248_s19  ;;  %s252_s1 = scalar_lea.vmem [#allocation6], %s873_s5 }
  0x7b   : > { %1150 = dma.done.wait (%p1636_p1), %s249_s7, 384  }
  0x7c   : > { %1152 = vsyncadd (%p1636_p1), %s249_s7, 4294966912  ;;  %v1433_v0 = vld [vmem:[%s252_s1] sm:$0xff]  ;;  %s1186_s20 = smov 127   ;;  %v1441_v2 = vld [vmem:[%s243_s4 + $0x8] sm:$0xff]  ;;  %v311_v5 = vlaneseq  ;;  %vm337_vm0 = vcmask 1046528   ;;  %v1187_v19 = vmov 0.0  }
  0x7d   : > { %v1435_v1 = vld [vmem:[%s243_s4] sm:$0xff]  ;;  %332 = vrot.lane.b32.xlu1 %v1433_v0, %s1186_s20  ;;  %v341_v4 = vrot.slane %v1433_v0, 1  ;;  %v339_v6 = vrot.slane %v1441_v2, 1  ;;  %vm396_vm11 = vcmask 1040384   ;;  %vm408_vm12 = vcmask 1045504   ;;  %s1188_s18 = smov 1  }
  0x7e   : > { %328 = vrot.lane.b32.xlu0 %v1435_v1, %s1186_s20  ;;  %v338_v3 = vrot.slane %v1435_v1, 1  ;;  %v1449_v8 = vand.u32 127, %v311_v5  ;;  %vm424_vm13 = vcmask 1041408   ;;  %s1189_s24 = smov 126   ;;  %s1190_s29 = smov 2   ;;  %vm1192_vm14 = vmmov 0  }
  0x7f   : > { %v342_v11 = vsel %vm337_vm0, %v339_v6, %v341_v4  ;;  %903 = vmatprep.mubr.msk.f32.mxu0 %vm1192_vm14, %v1187_v19  ;;  %910 = vmatprep.mubr.msk.f32.mxu1 %vm1192_vm14, %v1187_v19  ;;  %s261_s23 = scalar_lea.vmem [#allocation8], %s872_s6  ;;  %s875_s28 = sshll.u32 %s1417_s22, 1 }
  0x80   : > { %v347_v7 = vsel %vm337_vm0, %v341_v4, %v338_v3  ;;  %v340_v9 = vsel %vm337_vm0, %v338_v3, %v339_v6  ;;  %vm313_vm1 = vcmp.lt.s32.totalorder %v1449_v8, 127  ;;  %v361_v15 = vsub.f32 %v1441_v2, %v342_v11  ;;  %s293_s10 = scalar_lea.vmem [#allocation9], %s875_s28  ;;  %s889_s11 = sshll.u32 %s1171_s15, 5 }
  0x81   : > { %v362_v10 = vsub.f32 %v1433_v0, %v347_v7  ;;  %v360_v12 = vsub.f32 %v1435_v1, %v340_v9  ;;  %v1460_v20 = vsel %vm313_vm1, 1.0, %v1187_v19  ;;  %s731_s9 = sshll.u32 %s293_s10, 4  ;;  %s1569_s8 = scalar_lea.hbm %s1619_s3, %s889_s11  ;;  %s1564_s9 = int_to_ptr.vmem [resolvable:$true] %s731_s9 }
  0x82   : > { %330 = vrot.lane.b32.xlu0 %v1441_v2, %s1186_s20  ;;  %v364_v24 = vand.u32 2147483647, %v361_v15  ;;  %s717_s6 = scalar_lea.sflag [#allocation5], %s1417_s22  ;;  %s1093_s30 = scalar_lea.vmem %s1564_s9, 32 }
  0x83   : > { %v365_v17 = vand.u32 2147483647, %v362_v10  ;;  %v363_v21 = vand.u32 2147483647, %v360_v12  ;;  %v1191_v10 = vmov 0.0|0.0   ;;  %p1094_p0 = scmp.ne.s32.totalorder %s1564_s9, %s1093_s30  ;;  %p1645_p6 = scmp.ne.s32.totalorder %s1628_s25, 0 }
  0x84   : > { %vm367_vm8 = vcmp.gt.f32.partialorder %v364_v24, 1.0  ;;  %913 = vmatprep.subr.bf16.mxu0 %v1191_v10  ;;  %916 = vmatprep.subr.bf16.mxu1 %v1191_v10  ;;  %s1195_s15 = smov [#allocation9]  }
  0x85   : > { %vm368_vm2 = vcmp.gt.f32.partialorder %v365_v17, 1.0  ;;  %vm366_vm3 = vcmp.gt.f32.partialorder %v363_v21, 1.0  ;;  %v1193_v17 = vmov 0   ;;  %p1095_p8 = pnand %p1094_p0, %p1645_p6  ;;  %s1097_s4 = sshll.u32 %s1195_s15, 4  ;;  %s1098_s4 = int_to_ptr.vmem [resolvable:$false] %s1097_s4 }
  0x86   : > { %s1099_s19 = scalar_lea.vmem %s1098_s4, 64  ;;  %p1100_p12 = scmp.lt.s32.totalorder %s1564_s9, %s1098_s4 }
  0x87   : > { %p1096_p9 = pneg %p1095_p8  ;;  %p1101_p4 = scmp.lt.s32.totalorder %s1099_s19, %s1093_s30 }
  0x89   : > { %p1102_p10 = por %p1101_p4, %p1100_p12 }
  0x8b   : > { %p1103_p13 = pnand %p1102_p10, %p1096_p9 }
  0xef   : > { %v333_v13 = vpop.permute.xlu1 %332 }
  0xf0   : > { %v329_v14 = vpop.permute.xlu0 %328  ;;  %v350_v16 = vsub.f32 %v1433_v0, %v333_v13  ;;  %v309_v13 = vld [vmem:[%s261_s23] sm:$0xff] }
  0xf1   : > { %v348_v18 = vsub.f32 %v1435_v1, %v329_v14  ;;  %v310_v14 = vld [vmem:[%s261_s23 + $0x8] sm:$0xff]  ;;  %vm508_vm15 = vcmp.gt.f32.partialorder %v309_v13, 0.0 }
  0xf2   : > { %v353_v22 = vand.u32 2147483647, %v350_v16  ;;  %vm509_vm1 = vcmp.gt.f32.partialorder %v310_v14, 0.0 }
  0xf3   : > { %v351_v23 = vand.u32 2147483647, %v348_v18  ;;  %v510_v18 = vsel %vm508_vm15, 1, %v1193_v17 }
  0xf4   : > { %v331_v25 = vpop.permute.xlu0 %330  ;;  %v356_v26 = vmul.f32 %v1460_v20, %v353_v22 }
  0xf5   : > { %v354_v27 = vmul.f32 %v1460_v20, %v351_v23  ;;  %v349_v28 = vsub.f32 %v1441_v2, %v331_v25  ;;  %v511_v25 = vsel %vm509_vm1, 1, %v1193_v17 }
  0xf6   : > { %vm359_vm4 = vcmp.gt.f32.partialorder %v356_v26, 1.0 }
  0xf7   : > { %vm357_vm5 = vcmp.gt.f32.partialorder %v354_v27, 1.0  ;;  %v352_v29 = vand.u32 2147483647, %v349_v28  ;;  %vm371_vm6 = vmor %vm359_vm4, %vm368_vm2  ;;  %vm316_vm2 = vcmp.lt.s32.totalorder %v1449_v8, 126  ;;  %v512_v27 = vrot.slane %v510_v18, 6 }
  0xf8   : > { %v882_v30 = vsel %vm371_vm6, 1.0, %v1187_v19  ;;  %vm369_vm7 = vmor %vm357_vm5, %vm366_vm3  ;;  %v877_v26 = vsel %vm316_vm2, 1.0, %v1187_v19  ;;  %vm322_vm3 = vcmp.ge.s32.totalorder %v1449_v8, 2  ;;  %vm499_vm4 = vcmp.gt.f32.partialorder %v1435_v1, 0.0 }
  0xf9   : > { %v355_v31 = vmul.f32 %v1460_v20, %v352_v29  ;;  %v384_v32 = vrot.slane %v882_v30, 1  ;;  %v880_v33 = vsel %vm369_vm7, 1.0, %v1187_v19  ;;  %v394_v35 = vrot.slane %v882_v30, 7 }
  0xfa   : > { %v381_v34 = vrot.slane %v880_v33, 1  ;;  %v397_v38 = vrot.slane %v880_v33, 7  ;;  %v412_v41 = vrot.slane %v882_v30, 2  ;;  %v422_v42 = vrot.slane %v882_v30, 6 }
  0xfb   : > { %vm358_vm9 = vcmp.gt.f32.partialorder %v355_v31, 1.0  ;;  %v409_v48 = vrot.slane %v880_v33, 2  ;;  %v425_v52 = vrot.slane %v880_v33, 6  ;;  %vm502_vm5 = vcmp.lt.f32.partialorder %v1435_v1, 191.0 }
  0xfc   : > { %vm370_vm10 = vmor %vm358_vm9, %vm367_vm8  ;;  %v390_v37 = vsel %vm337_vm0, %v384_v32, %v381_v34  ;;  %v404_v51 = vsel %vm396_vm11, %v394_v35, %v397_v38  ;;  %vm1508_vm6 = vcmp.ne.s32.totalorder %v512_v27, 0  ;;  %vm501_vm7 = vcmp.gt.f32.partialorder %v1433_v0, 0.0 }
  0xfd   : > { %v881_v36 = vsel %vm370_vm10, 1.0, %v1187_v19  ;;  %v393_v47 = vadd.f32 %v882_v30, %v390_v37  ;;  %v432_v63 = vsel %vm424_vm13, %v422_v42, %v425_v52  ;;  %v418_v3 = vsel %vm408_vm12, %v412_v41, %v409_v48  ;;  %vm1522_vm9 = vmand %vm499_vm4, %vm502_vm5 }
  0xfe   : > { %v382_v39 = vrot.slane %v881_v36, 1  ;;  %v398_v40 = vrot.slane %v881_v36, 7  ;;  %v410_v46 = vrot.slane %v881_v36, 2  ;;  %v426_v54 = vrot.slane %v881_v36, 6  ;;  %vm518_vm15 = vmand %vm1522_vm9, %vm1508_vm6 }
  0xff   : > { %vm504_vm8 = vcmp.lt.f32.partialorder %v1433_v0, 191.0  ;;  %vm500_vm10 = vcmp.gt.f32.partialorder %v1441_v2, 0.0 }
 0x100   : > { %v383_v43 = vsel %vm337_vm0, %v381_v34, %v382_v39  ;;  %v385_v44 = vsel %vm337_vm0, %v382_v39, %v384_v32  ;;  %v400_v45 = vsel %vm396_vm11, %v398_v40, %v394_v35  ;;  %v399_v53 = vsel %vm396_vm11, %v397_v38, %v398_v40 }
 0x101   : > { %v391_v49 = vadd.f32 %v880_v33, %v383_v43  ;;  %v392_v50 = vadd.f32 %v881_v36, %v385_v44  ;;  %v407_v57 = vadd.f32 %v400_v45, %v393_v47  ;;  %v413_v58 = vsel %vm408_vm12, %v410_v46, %v412_v41 }
 0x102   : > { %v411_v59 = vsel %vm408_vm12, %v409_v48, %v410_v46  ;;  %v427_v62 = vsel %vm424_vm13, %v425_v52, %v426_v54  ;;  %v428_v7 = vsel %vm424_vm13, %v426_v54, %v422_v42  ;;  %vm319_vm0 = vcmp.ge.s32.totalorder %v1449_v8, 1 }
 0x103   : > { %v406_v55 = vadd.f32 %v399_v53, %v392_v50  ;;  %v405_v56 = vadd.f32 %v404_v51, %v391_v49  ;;  %v421_v6 = vadd.f32 %v418_v3, %v407_v57  ;;  %v878_v21 = vsel %vm319_vm0, 1.0, %v1187_v19 }
 0x104   : > { %v513_v32 = vrot.slane %v511_v25, 6  ;;  %v536_v33 = vrot.slane %v310_v14, 6  ;;  %v879_v38 = vsel %vm322_vm3, 1.0, %v1187_v19  ;;  %v535_v8 = vrot.slane %v309_v13, 6 }
 0x105   : > { %v420_v60 = vadd.f32 %v413_v58, %v406_v55  ;;  %v419_v61 = vadd.f32 %v411_v59, %v405_v56  ;;  %v1483_v9 = vadd.f32 %v428_v7, %v421_v6  ;;  %vm503_vm11 = vcmp.lt.f32.partialorder %v1441_v2, 191.0 }
 0x106   : > { %v514_v45 = vsel %vm424_vm13, %v512_v27, %v513_v32  ;;  %v537_v46 = vsel %vm424_vm13, %v535_v8, %v536_v33  ;;  %v541_v53 = vsub.f32 %v1435_v1, %v535_v8  ;;  %vm1533_vm13 = vmand %vm501_vm7, %vm504_vm8  ;;  %vm1537_vm14 = vcmp.ne.s32.totalorder %v513_v32, 0 }
 0x107   : > { %v1477_v4 = vadd.f32 %v427_v62, %v420_v60  ;;  %v433_v5 = vadd.f32 %v432_v63, %v419_v61  ;;  %v543_v1 = vsub.f32 %v1433_v0, %v536_v33  ;;  %vm516_vm0 = vcmp.ne.s32.totalorder %v514_v45, 0  ;;  %vm506_vm2 = vmand %vm500_vm10, %vm503_vm11 }
 0x108   : > { %v542_v60 = vsub.f32 %v1441_v2, %v537_v46  ;;  %v544_v3 = vand.u32 2147483647, %v541_v53  ;;  %vm520_vm3 = vmand %vm1533_vm13, %vm1537_vm14  ;;  %vm560_vm10 = vcmask 130048  }
 0x109   : > { %441 = vrot.lane.b32.xlu0 %v1477_v4, %s1186_s20  ;;  %439 = vrot.lane.b32.xlu1 %v433_v5, %s1186_s20  ;;  %vm519_vm5 = vmand %vm506_vm2, %vm516_vm0 }
 0x10a   : > { %v545_v7 = vand.u32 2147483647, %v542_v60 }
 0x10d   : > { %454 = vrot.lane.b32.xlu0 %v433_v5, %s1188_s18  ;;  %443 = vrot.lane.b32.xlu1 %v1483_v9, %s1186_s20 }
 0x111   : > { %458 = vrot.lane.b32.xlu0 %v1483_v9, %s1188_s18  ;;  %456 = vrot.lane.b32.xlu1 %v1477_v4, %s1188_s18 }
 0x115   : > { %471 = vrot.lane.b32.xlu0 %v1477_v4, %s1189_s24  ;;  %469 = vrot.lane.b32.xlu1 %v433_v5, %s1189_s24 }
 0x119   : > { %484 = vrot.lane.b32.xlu0 %v433_v5, %s1190_s29  ;;  %473 = vrot.lane.b32.xlu1 %v1483_v9, %s1189_s24 }
 0x11d   : > { %488 = vrot.lane.b32.xlu0 %v1483_v9, %s1190_s29  ;;  %486 = vrot.lane.b32.xlu1 %v1477_v4, %s1190_s29 }
 0x17b   : > { %v442_v11 = vpop.permute.xlu0 %441  ;;  %v440_v12 = vpop.permute.xlu1 %439 }
 0x17c   : > { %v448_v24 = vmul.f32 %v1460_v20, %v440_v12  ;;  %v449_v29 = vmul.f32 %v1460_v20, %v442_v11 }
 0x17e   : > { %v451_v34 = vadd.f32 %v448_v24, %v433_v5  ;;  %v452_v42 = vadd.f32 %v449_v29, %v1477_v4  ;;  %v546_v4 = vand.u32 2147483647, %v543_v1 }
 0x17f   : > { %v455_v15 = vpop.permute.xlu0 %454  ;;  %v444_v16 = vpop.permute.xlu1 %443 }
 0x180   : > { %v463_v28 = vmul.f32 %v878_v21, %v455_v15  ;;  %v450_v35 = vmul.f32 %v1460_v20, %v444_v16 }
 0x182   : > { %v466_v40 = vadd.f32 %v463_v28, %v451_v34  ;;  %v453_v47 = vadd.f32 %v450_v35, %v1483_v9 }
 0x183   : > { %v459_v22 = vpop.permute.xlu0 %458  ;;  %v457_v23 = vpop.permute.xlu1 %456 }
 0x184   : > { %v464_v37 = vmul.f32 %v878_v21, %v457_v23  ;;  %v465_v41 = vmul.f32 %v878_v21, %v459_v22 }
 0x186   : > { %v467_v52 = vadd.f32 %v464_v37, %v452_v42  ;;  %v468_v54 = vadd.f32 %v465_v41, %v453_v47 }
 0x187   : > { %v472_v30 = vpop.permute.xlu0 %471  ;;  %v470_v31 = vpop.permute.xlu1 %469 }
 0x188   : > { %v478_v36 = vmul.f32 %v877_v26, %v470_v31  ;;  %v479_v20 = vmul.f32 %v877_v26, %v472_v30 }
 0x18a   : > { %v481_v48 = vadd.f32 %v478_v36, %v466_v40  ;;  %v482_v58 = vadd.f32 %v479_v20, %v467_v52 }
 0x18b   : > { %v485_v43 = vpop.permute.xlu0 %484  ;;  %v474_v44 = vpop.permute.xlu1 %473 }
 0x18c   : > { %v493_v50 = vmul.f32 %v879_v38, %v485_v43  ;;  %v480_v51 = vmul.f32 %v877_v26, %v474_v44 }
 0x18e   : > { %v496_v55 = vadd.f32 %v493_v50, %v481_v48  ;;  %v483_v62 = vadd.f32 %v480_v51, %v468_v54 }
 0x18f   : > { %v489_v59 = vpop.permute.xlu0 %488  ;;  %v487_v61 = vpop.permute.xlu1 %486 }
 0x190   : > { %vm521_vm1 = vcmp.gt.f32.partialorder %v496_v55, 0.0  ;;  %v495_v63 = vmul.f32 %v879_v38, %v489_v59  ;;  %v494_v0 = vmul.f32 %v879_v38, %v487_v61 }
 0x191   : > { %vm524_vm4 = vmand %vm518_vm15, %vm521_vm1 }
 0x192   : > { %v498_v5 = vadd.f32 %v495_v63, %v483_v62  ;;  %v497_v6 = vadd.f32 %v494_v0, %v482_v58  ;;  %v883_v9 = vsel %vm524_vm4, 1.0, %v1187_v19  ;;  %v547_v10 = vsel %vm524_vm4, %v544_v3, 0.0 }
 0x193   : > { %v553_v16 = vrot.slane %v547_v10, 2  ;;  %v637_v17 = vrot.slane %v883_v9, 2 }
 0x194   : > { %vm523_vm6 = vcmp.gt.f32.partialorder %v498_v5, 0.0  ;;  %vm522_vm7 = vcmp.gt.f32.partialorder %v497_v6, 0.0 }
 0x195   : > { %vm526_vm8 = vmand %vm520_vm3, %vm523_vm6 }
 0x196   : > { %v885_v2 = vsel %vm526_vm8, 1.0, %v1187_v19  ;;  %v549_v11 = vsel %vm526_vm8, %v546_v4, 0.0  ;;  %vm525_vm9 = vmand %vm519_vm5, %vm522_vm7 }
 0x197   : > { %v556_v12 = vrot.slane %v549_v11, 2  ;;  %v640_v13 = vrot.slane %v885_v2, 2  ;;  %v884_v14 = vsel %vm525_vm9, 1.0, %v1187_v19  ;;  %v548_v15 = vsel %vm525_vm9, %v545_v7, 0.0 }
 0x198   : > { %v554_v18 = vrot.slane %v548_v15, 2  ;;  %v638_v21 = vrot.slane %v884_v14, 2  ;;  %v1194_v19 = vmov 1.0  }
 0x19a   : > { %v555_v22 = vsel %vm408_vm12, %v553_v16, %v554_v18  ;;  %v557_v23 = vsel %vm408_vm12, %v554_v18, %v556_v12  ;;  %v639_v24 = vsel %vm408_vm12, %v637_v17, %v638_v21  ;;  %v641_v25 = vsel %vm408_vm12, %v638_v21, %v640_v13 }
 0x19b   : > { %v914_v26 = vpack.c.bf16 %v557_v23, %v555_v22  ;;  %v917_v27 = vpack.c.bf16 %v641_v25, %v639_v24 }
 0x19d   : > { %915 = vmatpush3.bf16.msra.mxu0 %v914_v26  ;;  %918 = vmatpush3.bf16.msra.mxu1 %v917_v27 }
 0x1a0   : > { %904 = vmatmul.mubr.msk.f32.vlgmr.msra.gmra.mrb[0].mxu0 %vm560_vm10, %v1194_v19  ;;  %911 = vmatmul.mubr.msk.f32.vlgmr.msra.gmra.mrb[0].mxu1 %vm560_vm10, %v1194_v19 }
 0x273   : > { %v630_v28 = vpop.f32.mrb[0].mxu0  ;;  %v710_v29 = vpop.f32.mrb[0].mxu1 }
 0x274   : > { %714 = vst [vmem:[%s293_s10] sm:$0x1] %v630_v28  ;;  %715 = vst [vmem:[%s293_s10 + $0x1] sm:$0x1] %v710_v29  ;;  %v905_v30 = vpop.f32.mrb[1].mxu0  ;;  %v912_v31 = vpop.f32.mrb[1].mxu1 }
 0x275   : > { %1106 = shalt.err (!%p1103_p13)
}
 0x276   : > { %s1107_s22 = scalar_lea.hbm %s1569_s8, 32  ;;  %s1111_s1 = scalar_lea.hbm %s1619_s3, 64 }
 0x277   : > { %p1108_p11 = scmp.ne.s32.totalorder %s1569_s8, %s1107_s22  ;;  %p1112_p5 = scmp.lt.u32.totalorder %s1569_s8, %s1619_s3 }
 0x278   : > { %p1113_p2 = scmp.lt.u32.totalorder %s1111_s1, %s1107_s22  ;;  %p1115_p0 = scmp.lt.u32.totalorder %s1107_s22, %s1569_s8 }
 0x279   : > { %p1109_p7 = pnand %p1108_p11, %p1645_p6 }
 0x27a   : > { %p1114_p1 = por %p1113_p2, %p1112_p5 }
 0x27b   : > { %p1110_p3 = pneg %p1109_p7 }
 0x27c   : > { %p1116_p8 = por %p1115_p0, %p1114_p1 }
 0x27e   : > { %p1117_p9 = pnand %p1116_p8, %p1110_p3 }
 0x280   : > { %1120 = shalt.err (!%p1117_p9)
}
 0x281   : > { %926 = dma.vmem_to_hbm [thread:$0]  (%p1645_p6), %s1564_s9, 32, %s1569_s8, %s717_s6  }
 0x282 PF: > { %s743_s24 = sand.u32 1, %s1159_s12   ;;  %p1646_p12 = scmp.ne.s32.totalorder %s1629_s27, 0 }
 0x283   : > { %p1647_p4 = scmp.ge.s32.totalorder %s1179_s17, 2  ;;  %s744_s29 = scalar_lea.sflag [#allocation5], %s743_s24 }
 0x285   : > { %p939_p10 = pnand %p1647_p4, %p1646_p12 }
 0x287   : > { %1154 = dma.done.wait (!%p939_p10), %s744_s29, 32  }
 0x288   : > { %1156 = vsyncadd (!%p939_p10), %s744_s29, 4294967264  ;;  %s22_s17 = sadd.s32 1, %s1179_s17   ;;  %s1648_s25 = sld [smem:[#allocation13_spill]] }
 0x289   : > { %p19_p13 = scmp.ge.s32.totalorder %s22_s17, 4   ;;  %s1649_s12 = smov %s1163_s13 }
 0x28a   : > { %s1650_s13 = smov %s1167_s14  ;;  %s1651_s14 = smov %s1276_s26 }
 0x28b   : > { %s1652_s15 = smov %s1175_s16  ;;  %21 = sbr.rel (!%p19_p13) target bundleno = 11 (0xb), region = 101 }
 0x28e   : > { %s1653_s16 = smov %s1648_s25 }
 0x292   :  { %749 = vsyncpa [#allocation4], 1 }
 0x293   :  { %751 = vsyncpa [#allocation4 + $0x1], 1 }
 0x294   :  { %752 = vsyncpa [#allocation7], 1 }
 0x295   :  { %754 = vsyncpa [#allocation7 + $0x1], 1 }
 0x296   :  { %755 = vsyncpa [#allocation5], 1 }
 0x297   :  { %757 = vsyncpa [#allocation5 + $0x1], 1 }

</bundles_post_ra>
